<compile_context>
chip_gen: v5e
topology: v5e:2x2
jax: 0.10.0
libtpu: 0.0.40
codegen_flags: <defaults>
</compile_context>

<pallas_src>
import jax
import jax.numpy as jnp
from jax.experimental import pallas as pl
from jax.experimental.pallas import tpu as pltpu


def _linear1x1_kernel(x_ref, w_ref, b_ref, o_ref, acc_ref):
    # x_ref: (tk, TM)   w_ref: (tco, tk)   b_ref: (tco, 1)
    # o_ref: (tco, TM)  acc_ref: (tco, TM) f32 scratch
    k = pl.program_id(3)

    @pl.when(k == 0)
    def _():
        acc_ref[...] = jnp.zeros_like(acc_ref)

    acc_ref[...] += jnp.dot(
        w_ref[...], x_ref[...], preferred_element_type=jnp.float32
    )

    @pl.when(k == pl.num_programs(3) - 1)
    def _():
        o_ref[...] = (acc_ref[...] + b_ref[...]).astype(o_ref.dtype)


def _vmem_capacity_bytes():
    try:
        return int(pltpu.get_tpu_info().vmem_capacity_bytes)
    except Exception:
        return 64 * 1024 * 1024  # conservative fallback (v7x per-TC VMEM)


def _pick_k_tile(c_in, cap=2048):
    """Reduction tile must divide C_in exactly (ragged K blocks would
    accumulate garbage)."""
    if c_in <= cap:
        return c_in
    t = (cap // 128) * 128
    while t >= 128:
        if c_in % t == 0:
            return t
        t -= 128
    # TODO(synk): no 128-multiple divisor; keep K un-tiled (may need huge VMEM
    # for extreme C_in).  A masked-accumulate variant would remove this.
    return c_in


def _pick_co_tile(c_out, cap=512):
    # Ragged last C_out block is safe (rows past C_out are never written back);
    # cap is a multiple of 8 to satisfy the sublane constraint when tco < C_out.
    return c_out if c_out <= cap else cap


def linear_1x1_conv(x, weight, bias, *, tile_m=8192):
    """1x1 Conv2d forward (same semantics as torch.nn.Conv2d(c_in, c_out, 1)).

    x:      (N, C_in, H, W)  float32
    weight: (C_out, C_in)    float32  (Conv2d weight (C_out, C_in, 1, 1) squeezed)
    bias:   (C_out,)         float32
    returns (N, C_out, H, W) float32
    """
    N, C_in, H, W = x.shape
    C_out = weight.shape[0]
    HW = H * W
    itemsize = jnp.dtype(x.dtype).itemsize

    # Free reshapes: channel axis is the (small) contraction dim; the big
    # spatial axis lands on lanes for both input and output.
    x3d = x.reshape(N, C_in, HW)
    b2d = bias.reshape(C_out, 1)

    # --- Generation-aware tile budget ------------------------------------
    vmem_cap = _vmem_capacity_bytes()
    # ~half of physical VMEM for tiles: 64 MiB on v5e/v6e (128 MiB), 32 MiB on
    # v7x (64 MiB).  Remaining half is headroom for DMA scratch / compiler.
    budget = min(vmem_cap // 2, 64 * 1024 * 1024)

    tk = _pick_k_tile(C_in)
    tco = _pick_co_tile(C_out)

    # Bytes per spatial lane: double-buffered x + out tiles plus f32 accumulator.
    per_lane = (2 * tk + 2 * tco) * itemsize + tco * 4
    fixed = (2 * tco * tk + 2 * tco) * itemsize  # weight + bias buffers
    max_tm = max(128, (budget - fixed) // per_lane)

    tm = min(tile_m, max_tm)
    if tm >= HW:
        tm = HW                            # single full-width block (= array dim)
    else:
        tm = max(128, (tm // 128) * 128)   # lane-aligned partial block

    co_blocks = pl.cdiv(C_out, tco)
    k_blocks = pl.cdiv(C_in, tk)

    # v7x has 2 TensorCores: make sure there are >= 2 parallel grid points,
    # otherwise one TC idles (up to 2x loss).  v5e/v6e (1 TC) are unaffected.
    if N * co_blocks * pl.cdiv(HW, tm) < 2 and HW >= 256:
        tm = max(128, ((HW // 2) // 128) * 128)

    j_blocks = pl.cdiv(HW, tm)
    grid = (N, j_blocks, co_blocks, k_blocks)

    # --- Explicit scoped-VMEM limit matching actual usage ----------------
    vmem_usage = (
        2 * tk * tm          # x tile, double-buffered
        + 2 * tco * tm       # out tile, double-buffered
        + 2 * tco * tk       # weight tile, double-buffered
        + 2 * tco            # bias tile
    ) * itemsize + tco * tm * 4  # f32 accumulator scratch
    vmem_limit = int(
        min(
            max(vmem_cap - (4 << 20), 16 << 20),      # never exceed physical
            max(vmem_usage + (8 << 20), 32 << 20),    # usage + headroom
        )
    )

    # HBM traffic: x read once (resident across the C_out sweep), weight/bias
    # re-read per (n, spatial) block, output written once.
    bytes_accessed = int(
        (
            N * C_in * HW
            + N * j_blocks * (C_in * C_out + C_out)
            + N * C_out * HW
        )
        * itemsize
    )

    out3d = pl.pallas_call(
        _linear1x1_kernel,
        out_shape=jax.ShapeDtypeStruct((N, C_out, HW), x.dtype),
        grid_spec=pltpu.PrefetchScalarGridSpec(
            num_scalar_prefetch=0,
            grid=grid,
            in_specs=[
                # Activations: one batch element, tk channels, TM spatial lanes.
                # Constant in `co` -> stays VMEM-resident across the C_out sweep.
                pl.BlockSpec(
                    (pl.Squeezed(), tk, tm), lambda n, j, co, k: (n, k, j)
                ),
                # Weight / bias tiles (weight need not be fully resident).
                pl.BlockSpec((tco, tk), lambda n, j, co, k: (co, k)),
                pl.BlockSpec((tco, 1), lambda n, j, co, k: (co, 0)),
            ],
            out_specs=pl.BlockSpec(
                (pl.Squeezed(), tco, tm), lambda n, j, co, k: (n, co, j)
            ),
            scratch_shapes=[pltpu.VMEM((tco, tm), jnp.float32)],
        ),
        compiler_params=pltpu.CompilerParams(
            dimension_semantics=("parallel", "parallel", "parallel", "arbitrary"),
            vmem_limit_bytes=vmem_limit,
        ),
        cost_estimate=pl.CostEstimate(
            flops=2 * N * HW * C_in * C_out,
            bytes_accessed=bytes_accessed,
            transcendentals=0,
        ),
    )(x3d, weight, b2d)

    # Free reshape back to NCHW.
    return out3d.reshape(N, C_out, H, W)


def init_params(key, c_in, c_out):
    # Deterministic init mimicking PyTorch Conv2d default:
    # U(-bound, bound), bound = 1/sqrt(fan_in), fan_in = c_in * 1 * 1.
    kw, kb = jax.random.split(key)
    bound = 1.0 / jnp.sqrt(jnp.float32(c_in))
    weight = jax.random.uniform(kw, (c_out, c_in), jnp.float32, -bound, bound)
    bias = jax.random.uniform(kb, (c_out,), jnp.float32, -bound, bound)
    return weight, bias


if __name__ == "__main__":
    key = jax.random.PRNGKey(0)
    kx, kp = jax.random.split(key)

    N, C_in, C_out, H, W = 2, 4, 8, 16, 16
    x = jax.random.normal(kx, (N, C_in, H, W), jnp.float32)
    weight, bias = init_params(kp, C_in, C_out)

    out = linear_1x1_conv(x, weight, bias)
    out = jax.block_until_ready(out)

    # Reference check (plain JAX einsum, same semantics as Conv2d 1x1 + bias).
    ref = jnp.einsum("oc,nchw->nohw", weight, x) + bias[None, :, None, None]
    assert out.shape == (N, C_out, H, W), out.shape
    assert jnp.allclose(out, ref, atol=1e-5, rtol=1e-5), "mismatch vs reference"

    print("KERNEL_OK")
</pallas_src>

<mosaic_0001>
module attributes {stable_mosaic.version = 11 : i64} {
  func.func @_linear1x1_kernel(%arg0: i32, %arg1: i32, %arg2: i32, %arg3: i32, %arg4: memref<1x4x256xf32, #tpu.memory_space<vmem>>, %arg5: memref<8x4xf32, #tpu.memory_space<vmem>>, %arg6: memref<8x1xf32, #tpu.memory_space<vmem>>, %arg7: memref<1x8x256xf32, #tpu.memory_space<vmem>>, %arg8: memref<8x256xf32, #tpu.memory_space<vmem>>) attributes {dimension_semantics = [#tpu.dimension_semantics<parallel>, #tpu.dimension_semantics<parallel>, #tpu.dimension_semantics<parallel>, #tpu.dimension_semantics<arbitrary>], iteration_bounds = array<i64: 2, 1, 1, 1>, scalar_prefetch = 0 : i64, scratch_operands = 1 : i64, tpu.core_type = #tpu.core_type<tc>, window_params = [{transform_indices = @transform_0, window_bounds = array<i64: 1, 4, 256>}, {transform_indices = @transform_1, window_bounds = array<i64: 8, 4>}, {transform_indices = @transform_2, window_bounds = array<i64: 8, 1>}, {transform_indices = @transform_3, window_bounds = array<i64: 1, 8, 256>}]} {
    %c0_i32 = arith.constant 0 : i32
    %0 = arith.cmpi eq, %arg3, %c0_i32 : i32
    %1 = arith.extui %0 : i1 to i32
    %c0_i32_0 = arith.constant 0 : i32
    %2 = arith.cmpi ne, %1, %c0_i32_0 : i32
    scf.if %2 {
      %cst_11 = arith.constant 0.000000e+00 : f32
      %13 = vector.broadcast %cst_11 : f32 to vector<8x256xf32>
      %c0_12 = arith.constant 0 : index
      %c0_13 = arith.constant 0 : index
      %14 = vector.load %arg8[%c0_12, %c0_13] : memref<8x256xf32, #tpu.memory_space<vmem>>, vector<8x256xf32>
      tpu.vector_store %arg8[%c0_12, %c0_13], %13 {strides = array<i32>} : memref<8x256xf32, #tpu.memory_space<vmem>>, vector<8x256xf32>,
    } else {
    }
    %c0 = arith.constant 0 : index
    %c0_1 = arith.constant 0 : index
    %3 = vector.load %arg8[%c0, %c0_1] : memref<8x256xf32, #tpu.memory_space<vmem>>, vector<8x256xf32>
    %c0_2 = arith.constant 0 : index
    %c0_3 = arith.constant 0 : index
    %4 = vector.load %arg5[%c0_2, %c0_3] : memref<8x4xf32, #tpu.memory_space<vmem>>, vector<8x4xf32>
    %c0_4 = arith.constant 0 : index
    %c0_5 = arith.constant 0 : index
    %c0_6 = arith.constant 0 : index
    %5 = vector.load %arg4[%c0_4, %c0_5, %c0_6] : memref<1x4x256xf32, #tpu.memory_space<vmem>>, vector<1x4x256xf32>
    %6 = vector.shape_cast %5 : vector<1x4x256xf32> to vector<4x256xf32>
    %cst = arith.constant dense<0.000000e+00> : vector<8x256xf32>
    %7 = tpu.matmul %4, %6, %cst {dimension_numbers = #tpu.dot_dimension_numbers<[1], [0], [0], [1], [0, 0, 1, 1], [], []>} : vector<8x4xf32>, vector<4x256xf32>, vector<8x256xf32> -> vector<8x256xf32>
    %8 = arith.addf %3, %7 : vector<8x256xf32>
    %c0_7 = arith.constant 0 : index
    %c0_8 = arith.constant 0 : index
    %9 = vector.load %arg8[%c0_7, %c0_8] : memref<8x256xf32, #tpu.memory_space<vmem>>, vector<8x256xf32>
    tpu.vector_store %arg8[%c0_7, %c0_8], %8 {strides = array<i32>} : memref<8x256xf32, #tpu.memory_space<vmem>>, vector<8x256xf32>,
    %c0_i32_9 = arith.constant 0 : i32
    %10 = arith.cmpi eq, %arg3, %c0_i32_9 : i32
    %11 = arith.extui %10 : i1 to i32
    %c0_i32_10 = arith.constant 0 : i32
    %12 = arith.cmpi ne, %11, %c0_i32_10 : i32
    scf.if %12 {
      %c0_11 = arith.constant 0 : index
      %c0_12 = arith.constant 0 : index
      %13 = vector.load %arg8[%c0_11, %c0_12] : memref<8x256xf32, #tpu.memory_space<vmem>>, vector<8x256xf32>
      %c0_13 = arith.constant 0 : index
      %c0_14 = arith.constant 0 : index
      %14 = vector.load %arg6[%c0_13, %c0_14] : memref<8x1xf32, #tpu.memory_space<vmem>>, vector<8x1xf32>
      %15 = vector.broadcast %14 : vector<8x1xf32> to vector<8x256xf32>
      %16 = arith.addf %13, %15 : vector<8x256xf32>
      %c0_15 = arith.constant 0 : index
      %c0_16 = arith.constant 0 : index
      %c0_17 = arith.constant 0 : index
      %17 = vector.load %arg7[%c0_15, %c0_16, %c0_17] : memref<1x8x256xf32, #tpu.memory_space<vmem>>, vector<1x8x256xf32>
      %18 = vector.shape_cast %17 : vector<1x8x256xf32> to vector<8x256xf32>
      %19 = vector.shape_cast %16 : vector<8x256xf32> to vector<1x8x256xf32>
      tpu.vector_store %arg7[%c0_15, %c0_16, %c0_17], %19 {strides = array<i32>} : memref<1x8x256xf32, #tpu.memory_space<vmem>>, vector<1x8x256xf32>,
    } else {
    }
    return
  }
  func.func @transform_0(%arg0: i32, %arg1: i32, %arg2: i32, %arg3: i32) -> (i32, i32, i32) {
    %c0_i32 = arith.constant 0 : i32
    return %arg0, %arg3, %arg1 : i32, i32, i32
  }
  func.func @transform_1(%arg0: i32, %arg1: i32, %arg2: i32, %arg3: i32) -> (i32, i32) {
    %c0_i32 = arith.constant 0 : i32
    return %arg2, %arg3 : i32, i32
  }
  func.func @transform_2(%arg0: i32, %arg1: i32, %arg2: i32, %arg3: i32) -> (i32, i32) {
    %c0_i32 = arith.constant 0 : i32
    %c0_i32_0 = arith.constant 0 : i32
    return %arg2, %c0_i32 : i32, i32
  }
  func.func @transform_3(%arg0: i32, %arg1: i32, %arg2: i32, %arg3: i32) -> (i32, i32, i32) {
    %c0_i32 = arith.constant 0 : i32
    return %arg0, %arg2, %arg1 : i32, i32, i32
  }
}

</mosaic_0001>

<bundles_post_ra>
// kernel: tpu_custom_call.1
= control target key start
LH: loop header
LB: loop body
LE: loop exit
PB: predicated region body
PF: predicated region fallthrough
CT: control target
= control target key end

     0   :  { %8 = vsyncpa [#allocation4], 0  ;;  %s783_s0 = inlined_call_operand.vmem [shape: f32[2,4,256], index: 0, kind: input, shape index: {}]   ;;  %s784_s1 = inlined_call_operand.vmem [shape: f32[8,4], index: 1, kind: input, shape index: {}]   ;;  %s785_s2 = inlined_call_operand.vmem [shape: f32[8,1], index: 2, kind: input, shape index: {}]   ;;  %s786_s3 = inlined_call_operand.hbm [shape: f32[2,8,256], index: 3, kind: output, shape index: {}]  }
   0x1   :  { %10 = vsyncpa [#allocation4 + $0x1], 0  ;;  %s680_s12 = smov 0   ;;  %s682_s13 = smov 0  }
   0x2   :  { %s684_s14 = smov 0   ;;  %s686_s15 = smov 0  }
   0x3   :  { %s688_s16 = smov 0   ;;  %s690_s17 = smov 0  }
   0x4 LB: > { %s501_s18 = sadd.s32 4294967295, %s657_s17   ;;  %s502_s19 = sadd.s32 4294967294, %s657_s17   ;;  %s657_s17 = sphi %s690_s17, %s16_s17   ;;  %s653_s16 = sphi %s688_s16, %s793_s16   ;;  %s649_s15 = sphi %s686_s15, %s792_s15   ;;  %s645_s14 = sphi %s684_s14, %s791_s14   ;;  %s641_s13 = sphi %s682_s13, %s790_s13   ;;  %s637_s12 = sphi %s680_s12, %s789_s12  }
   0x5   : > { %s42_s20 = sadd.s32 1, %s653_s16  ;;  %s137_s21 = sadd.s32 1, %s645_s14 }
   0x6   : > { %p44_p0 = scmp.ge.s32.totalorder %s42_s20, 2  ;;  %p147_p1 = scmp.ne.s32.totalorder %s645_s14, %s641_s13 }
   0x7   : > { %p148_p2 = scmp.eq.s32.totalorder %s501_s18, 1  ;;  %p153_p3 = scmp.ne.s32.totalorder %s641_s13, %s637_s12 }
   0x8   : > { %s795_s20 = smov (%p44_p0, %s42_s20), 0  ;;  %p154_p5 = scmp.eq.s32.totalorder %s502_s19, 1 }
   0x9   : > { %p720_p4 = por %p148_p2, %p147_p1  ;;  %s130_s23 = ssub.s32 %s653_s16, %s795_s20 }
   0xa   : > { %p507_p6 = scmp.ge.s32.totalorder %s657_s17, 1  ;;  %p135_p7 = scmp.eq.s32.totalorder %s130_s23, 0 }
   0xb   : > { %p727_p8 = por %p154_p5, %p153_p3  ;;  %p206_p9 = scmp.lt.s32.totalorder %s657_s17, 3 }
   0xc   : > { %s733_s25 = scalar_select %p135_p7, %s645_s14, %s137_s21  }
   0xd   : > { %p207_p10 = pnand %p507_p6, %p206_p9 }
   0xe   : > { %p250_p11 = scmp.lt.s32.totalorder (!%p207_p10), %s649_s15, 1  ;;  %s246_s8 = sand.u32 (!%p207_p10), 1, %s641_s13  }
   0xf   : > { %210 = sbr.rel (%p207_p10) target bundleno = 166 (0xa6), region = 32  ;;  %s508_s9 = sshll.u32 (!%p207_p10), %s246_s8, 4 }
  0x10   : > { %s521_s10 = sshll.u32 (!%p207_p10), %s649_s15, 4  ;;  %s248_s21 = scalar_lea.vmem (!%p207_p10), [#allocation3], %s508_s9 }
  0x11   : > { %s373_s19 = scalar_lea.hbm (!%p207_p10), %s786_s3, %s521_s10  ;;  %s375_s23 = sshll.u32 (!%p207_p10), %s248_s21, 4  ;;  %s376_s23 = int_to_ptr.vmem [resolvable:$true] %s375_s23 }
  0x12   : > { %s377_s26 = sshll.u32 (!%p207_p10), %s373_s19, 4  ;;  %s358_s27 = scalar_lea.sflag (!%p207_p10), [#allocation4], %s246_s8  ;;  %s378_s26 = int_to_ptr.hbm [resolvable:$true] %s377_s26 }
  0x13   : > { %s599_s4 = scalar_lea.hbm (!%p207_p10), %s786_s3, 32 }
  0x14   : > { %v347_v0 = vld [vmem:[%s785_s2] sm:$0xff]  ;;  %v659_v1 = vmov 0   ;;  %s251_s28 = scalar_select %p250_p11, %s649_s15, 1  ;;  %vm293_vm0 = vcmask 1043456   ;;  %vm289_vm1 = vcmask 31744  }
  0x15   : > { %578 = vset.pattern.permute.xlu0 %v659_v1  ;;  %v283_v3 = vld [vmem:[%s784_s1] sm:$0xff] }
  0x16   : > { %350 = vperm.xlu0 %578, %v347_v0   ;;  %s520_s29 = sshll.u32 %s251_s28, 3  ;;  %s593_s28 = sshra.s32 %s378_s26, 4  ;;  %s594_s28 = int_to_ptr.hbm [resolvable:$true] %s593_s28 }
  0x17   : > { %s261_s5 = scalar_lea.vmem %s783_s0, %s520_s29  ;;  %s595_s15 = scalar_lea.hbm %s594_s28, 16 }
  0x18   : > { %v284_v2 = vld [vmem:[%s261_s5] sm:$0xff]  ;;  %p596_p12 = scmp.ne.s32.totalorder %s594_s28, %s595_s15  ;;  %p600_p1 = scmp.lt.s32.totalorder %s594_s28, %s786_s3 }
  0x19   : > { %286 = vst [vmem:[#allocation1] ss:$2 sm:$0xff] %v284_v2  ;;  %p601_p2 = scmp.lt.s32.totalorder %s599_s4, %s595_s15 }
  0x1a   : > { %p597_p13 = pnand %p596_p12, %p720_p4 }
  0x1b   : > { %p602_p3 = por %p601_p2, %p600_p1 }
  0x1c   : > { %p598_p0 = pneg %p597_p13 }
  0x1e   : > { %p603_p5 = pnand %p602_p3, %p598_p0 }
  0x20   : > { %v287_v4 = vld.sshfl [vmem:[#allocation1] sm:$0xff pattern:$0x75316420]  ;;  %v288_v5 = vld.sshfl [vmem:[#allocation1 + $0x8] sm:$0xff pattern:$0x75316420] }
  0x21   : > { %511 = vmatpush.msk.msra.mxu0 %vm293_vm0, %v287_v4  ;;  %513 = vmatpush.msk.msra.mxu1 %vm293_vm0, %v288_v5 }
  0x22   : > { %512 = vmatmul.msk.f32.vlgmr.msra.gmra.mxu0 %vm289_vm1, %v283_v3  ;;  %514 = vmatmul.msk.f32.vlgmr.msra.gmra.mxu1 %vm289_vm1, %v283_v3 }
  0x88   : > { %v351_v6 = vpop.permute.xlu0 %350 }
  0x9f   : > { %v315_v7 = vpop.f32.mrf.mxu0  ;;  %v335_v8 = vpop.f32.mrf.mxu1 }
  0xa0   : > { %v353_v9 = vadd.f32 %v351_v6, %v315_v7  ;;  %v354_v10 = vadd.f32 %v351_v6, %v335_v8 }
  0xa2   : > { %355 = vst [vmem:[%s248_s21] sm:$0xff] %v353_v9 }
  0xa3   : > { %356 = vst [vmem:[%s248_s21 + $0x8] sm:$0xff] %v354_v10 }
  0xa4   : > { %606 = shalt.err (!%p603_p5)
}
  0xa5   : > { %522 = dma.vmem_to_hbm [thread:$0]  (%p720_p4), %s376_s23, 256, %s378_s26, %s358_s27  }
  0xa6 PF: > { %p528_p6 = scmp.ge.s32.totalorder %s657_s17, 2  ;;  %s389_s7 = sand.u32 1, %s637_s12  }
  0xa7   : > { %s390_s8 = scalar_lea.sflag [#allocation4], %s389_s7 }
  0xa8   : > { %p525_p7 = pnand %p528_p6, %p727_p8 }
  0xaa   : > { %p526_p9 = pneg %p525_p7 }
  0xac   : > { %632 = dma.done.wait (%p526_p9), %s390_s8, 256  }
  0xad   : > { %634 = vsyncadd (%p526_p9), %s390_s8, 4294967040  ;;  %s16_s17 = sadd.s32 1, %s657_s17   ;;  %s789_s12 = smov %s641_s13 }
  0xae   : > { %p13_p10 = scmp.ge.s32.totalorder %s16_s17, 4   ;;  %s790_s13 = smov %s645_s14 }
  0xaf   : > { %s791_s14 = smov %s733_s25  ;;  %s792_s15 = smov %s653_s16 }
  0xb0   : > { %s793_s16 = smov %s795_s20  ;;  %15 = sbr.rel (!%p13_p10) target bundleno = 4 (0x4), region = 81 }
  0xb5   :  { %396 = vsyncpa [#allocation4], 1 }
  0xb6   :  { %398 = vsyncpa [#allocation4 + $0x1], 1 }

</bundles_post_ra>
